<compile_context>
chip_gen: v6e
topology: v6e:2x2x1
jax: 0.10.0
libtpu: 0.0.40
codegen_flags: <defaults>
</compile_context>

<pallas_src>
import functools
import math

import jax
import jax.numpy as jnp
from jax.experimental import pallas as pl
from jax.experimental.pallas import tpu as pltpu


# synthetic backbone stand-in conv params
KSIZE, STRIDE, PAD = 3, 2, 1
PATCH_PAD = 32     # zero-pad im2col patch dim (k*k*Cin = 27) up to 32
SOFT_PAD = 128     # lane-dense padded class dim for the outputs


# ----------------------------------------------------------------------------
# plain-JAX glue: im2col patch extraction
# ----------------------------------------------------------------------------
def im2col(x_nhwc, k=KSIZE, stride=STRIDE, pad=PAD):
    B, H, W, C = x_nhwc.shape
    xp = jnp.pad(x_nhwc, ((0, 0), (pad, pad), (pad, pad), (0, 0)))
    Ho = (H + 2 * pad - k) // stride + 1
    Wo = (W + 2 * pad - k) // stride + 1
    cols = []
    for i in range(k):
        for j in range(k):
            cols.append(xp[:, i:i + stride * (Ho - 1) + 1:stride,
                              j:j + stride * (Wo - 1) + 1:stride, :])
    patches = jnp.concatenate(cols, axis=-1)              # (B, Ho, Wo, k*k*C)
    return patches.reshape(B * Ho * Wo, k * k * C), Ho * Wo


def pick_b_tile(batch, hw, target_rows=512):
    """Batch tile: aim for >= ~512 conv-matmul rows per grid step (fills the
    256x256 MXU on v6e/v7x, keeps per-step VMEM small for v7x's 64 MiB).
    Output block first-dims must equal the batch or be a multiple of 8."""
    want = max(1, target_rows // max(hw, 1))
    if batch <= want:
        return batch
    for bt in range(min(batch, max(want, 8)), 7, -1):
        if batch % bt == 0 and bt % 8 == 0:
            return bt
    return batch


# ----------------------------------------------------------------------------
# fused kernel: conv-as-matmul + ReLU + GAP + L2NormScaled + (vis|sem) Linear
#               + prototype distances + per-head log_softmax + blend + argmax
# ----------------------------------------------------------------------------
def make_fused_kernel(scale, lamb, num_classes, b_tile, hw, chans):
    scale = float(scale)
    lamb = float(lamb)
    K = int(num_classes)
    K2 = 2 * K
    Bt = int(b_tile)
    HW = int(hw)
    C = int(chans)

    def kernel(p_ref, wc_ref, wcat_ref, pblkT_ref, psq_ref, soft_ref, pred_ref):
        # backbone stand-in: conv (bf16 MXU, f32 acc) + ReLU (VPU)
        conv = jnp.dot(p_ref[...], wc_ref[...],
                       preferred_element_type=jnp.float32)          # (Bt*HW, C)
        act = jnp.maximum(conv, 0.0)

        # global average pool: sum over HW on the XLU (sublane reduce);
        # 1/HW dropped — cancels exactly in the L2 normalization below.
        feats = jnp.sum(act.reshape(Bt, HW, C), axis=1)              # (Bt, C)

        # L2NormScaled: alpha * x / ||x||   (rsqrt -> EUP slot)
        sq = jnp.sum(feats * feats, axis=1, keepdims=True)
        x = feats * (scale * jax.lax.rsqrt(jnp.maximum(sq, 1e-24)))

        # merged feat_visual | feat_semantic projection + prototype dot products
        phi = jnp.dot(x.astype(jnp.bfloat16), wcat_ref[...],
                      preferred_element_type=jnp.float32)            # (Bt, 2K)
        dots = jnp.dot(phi.astype(jnp.bfloat16), pblkT_ref[...],
                       preferred_element_type=jnp.float32)           # (Bt, 2K)

        # z = -(||proto||^2 - 2 phi.proto) = -dist + ||phi||^2 ; the per-row,
        # per-head ||phi||^2 shift is removed exactly by log_softmax below.
        z = 2.0 * dots - psq_ref[...]                                # (Bt, 2K)

        # per-head (vis lanes [0,K), sem lanes [K,2K)) log_softmax with lane
        # masks — no sub-128 lane slices.
        lane = jax.lax.broadcasted_iota(jnp.int32, (Bt, K2), 1)
        is_vis = lane < K
        neg_inf = jnp.float32(-jnp.inf)
        z_vis = jnp.where(is_vis, z, neg_inf)
        z_sem = jnp.where(is_vis, neg_inf, z)
        m_v = jnp.max(z_vis, axis=1, keepdims=True)
        m_s = jnp.max(z_sem, axis=1, keepdims=True)
        lse_v = jnp.log(jnp.sum(jnp.exp(z_vis - m_v), axis=1, keepdims=True))
        lse_s = jnp.log(jnp.sum(jnp.exp(z_sem - m_s), axis=1, keepdims=True))
        # combined[:, :K] = log_softmax(-l2_vis); combined[:, K:] = log_softmax(-l2_sem)
        combined = z - jnp.where(is_vis, m_v + lse_v, m_s + lse_s)   # (Bt, 2K)

        # blend both heads into a lane-dense (Bt, 128) row with one tiny matmul:
        # soft[:, k] = lamb * combined[:, k] + (1-lamb) * combined[:, K+k],
        # soft[:, k>=K] = 0.  Selector matrix built from iota (no HBM traffic).
        row = jax.lax.broadcasted_iota(jnp.int32, (K2, SOFT_PAD), 0)
        col = jax.lax.broadcasted_iota(jnp.int32, (K2, SOFT_PAD), 1)
        bm = (jnp.where((col < K) & (row == col), lamb, 0.0)
              + jnp.where((col < K) & (row == col + K), 1.0 - lamb, 0.0))
        soft = jnp.dot(combined, bm.astype(jnp.float32),
                       preferred_element_type=jnp.float32)           # (Bt, 128)
        soft_ref[...] = soft                                         # unmasked vst

        # argmax along valid classes (first maximal index, matches torch.argmax)
        lane128 = jax.lax.broadcasted_iota(jnp.int32, (Bt, SOFT_PAD), 1)
        soft_m = jnp.where(lane128 < K, soft, neg_inf)
        mx = jnp.max(soft_m, axis=1, keepdims=True)
        pred = jnp.min(jnp.where(soft_m == mx, lane128, jnp.int32(K)),
                       axis=1, keepdims=True)                        # (Bt, 1)
        pred_ref[...] = jnp.broadcast_to(pred, (Bt, SOFT_PAD))       # lane-dense

    return kernel


# ----------------------------------------------------------------------------
# parameters
# ----------------------------------------------------------------------------
def init_params(key, num_classes, in_channels=3, out_channels=512):
    k = jax.random.split(key, 5)
    patch = KSIZE * KSIZE * in_channels
    return {
        "w_conv": 0.1 * jax.random.normal(k[0], (patch, out_channels), jnp.float32),
        "w_vis": 0.1 * jax.random.normal(k[1], (out_channels, num_classes), jnp.float32),
        "w_sem": 0.1 * jax.random.normal(k[2], (out_channels, num_classes), jnp.float32),
        "proto_vis": 0.1 * jax.random.normal(k[3], (num_classes, num_classes), jnp.float32),
        "proto_sem": 0.1 * jax.random.normal(k[4], (num_classes, num_classes), jnp.float32),
    }


def pack_params(params):
    """One-time packing of module weights into kernel-ready fused tensors
    (MXU operands pre-cast to bf16; squared prototype norms kept in f32)."""
    K = params["w_vis"].shape[-1]
    w_conv = params["w_conv"]
    patch, _ = w_conv.shape
    w_conv_pad = jnp.pad(w_conv, ((0, PATCH_PAD - patch), (0, 0))).astype(jnp.bfloat16)
    w_cat = jnp.concatenate([params["w_vis"], params["w_sem"]],
                            axis=1).astype(jnp.bfloat16)                     # (C, 2K)
    z = jnp.zeros((K, K), jnp.float32)
    proto_blkT = jnp.concatenate(
        [jnp.concatenate([params["proto_vis"].T, z], axis=1),
         jnp.concatenate([z, params["proto_sem"].T], axis=1)],
        axis=0).astype(jnp.bfloat16)                                         # (2K, 2K)
    proto_sq = jnp.concatenate(
        [jnp.sum(params["proto_vis"] ** 2, axis=1),
         jnp.sum(params["proto_sem"] ** 2, axis=1)])[None, :].astype(jnp.float32)
    return {"w_conv_pad": w_conv_pad, "w_cat": w_cat,
            "proto_blkT": proto_blkT, "proto_sq": proto_sq}


# ----------------------------------------------------------------------------
# full model forward
# ----------------------------------------------------------------------------
@functools.partial(jax.jit, static_argnames=("lamb",))
def model_forward(packed, x_nchw, lamb=0.5):
    # L2NormScaled(c=100, p=0.9): alpha = log(p*(c-2)/(1-p))
    c, p = 100.0, 0.9
    scale = math.log(p * (c - 2.0) / (1.0 - p))

    x_nhwc = jnp.transpose(x_nchw, (0, 2, 3, 1)).astype(jnp.float32)
    B = x_nchw.shape[0]
    patches, HW = im2col(x_nhwc)                                      # (B*HW, 27)
    patch = patches.shape[-1]
    patches = jnp.pad(patches, ((0, 0), (0, PATCH_PAD - patch)))      # (B*HW, 32)
    patches = patches.astype(jnp.bfloat16)                            # bf16 MXU input

    C = packed["w_conv_pad"].shape[-1]
    K = packed["w_cat"].shape[-1] // 2
    Bt = pick_b_tile(B, HW)
    nb = B // Bt

    kernel = make_fused_kernel(scale, lamb, K, Bt, HW, C)
    grid_spec = pltpu.PrefetchScalarGridSpec(
        num_scalar_prefetch=0,
        grid=(nb,),
        in_specs=[
            # batch-tiled patches (pipelined / double-buffered)
            pl.BlockSpec((Bt * HW, PATCH_PAD), lambda i: (i, 0)),
            # weights: constant index_map -> VMEM-resident, DMA'd once
            pl.BlockSpec((PATCH_PAD, C), lambda i: (0, 0)),
            pl.BlockSpec((C, 2 * K), lambda i: (0, 0)),
            pl.BlockSpec((2 * K, 2 * K), lambda i: (0, 0)),
            pl.BlockSpec((1, 2 * K), lambda i: (0, 0)),
        ],
        out_specs=[
            pl.BlockSpec((Bt, SOFT_PAD), lambda i: (i, 0)),
            pl.BlockSpec((Bt, SOFT_PAD), lambda i: (i, 0)),
        ],
    )
    soft_pad, pred_pad = pl.pallas_call(
        kernel,
        out_shape=(jax.ShapeDtypeStruct((B, SOFT_PAD), jnp.float32),
                   jax.ShapeDtypeStruct((B, SOFT_PAD), jnp.int32)),
        grid_spec=grid_spec,
        compiler_params=pltpu.CompilerParams(
            dimension_semantics=("parallel",)),   # v7x: shard batch tiles on 2 TCs
    )(patches, packed["w_conv_pad"], packed["w_cat"],
      packed["proto_blkT"], packed["proto_sq"])

    return pred_pad[:, 0], soft_pad[:, :K]


if __name__ == "__main__":
    key = jax.random.PRNGKey(0)
    k_param, k_x = jax.random.split(key)

    num_classes = 8          # feature_depth == num_classes by construction
    B, Cin, H, W = 2, 3, 16, 16

    params = init_params(k_param, num_classes, in_channels=Cin, out_channels=512)
    packed = pack_params(params)
    x = jax.random.normal(k_x, (B, Cin, H, W), jnp.float32)   # NCHW like PyTorch

    y_pred, soft_y_pred = model_forward(packed, x, lamb=0.5)
    jax.block_until_ready((y_pred, soft_y_pred))

    assert y_pred.shape == (B,) and y_pred.dtype == jnp.int32
    assert soft_y_pred.shape == (B, num_classes)
    print("KERNEL_OK")
</pallas_src>

<mosaic_0001>
module attributes {stable_mosaic.version = 11 : i64} {
  func.func @kernel(%arg0: i32, %arg1: memref<128x32xbf16, #tpu.memory_space<vmem>>, %arg2: memref<32x512xbf16, #tpu.memory_space<vmem>>, %arg3: memref<512x16xbf16, #tpu.memory_space<vmem>>, %arg4: memref<16x16xbf16, #tpu.memory_space<vmem>>, %arg5: memref<1x16xf32, #tpu.memory_space<vmem>>, %arg6: memref<2x128xf32, #tpu.memory_space<vmem>>, %arg7: memref<2x128xi32, #tpu.memory_space<vmem>>) attributes {dimension_semantics = [#tpu.dimension_semantics<parallel>], iteration_bounds = array<i64: 1>, scalar_prefetch = 0 : i64, scratch_operands = 0 : i64, tpu.core_type = #tpu.core_type<tc>, window_params = [{transform_indices = @transform_0, window_bounds = array<i64: 128, 32>}, {pipeline_mode = #tpu.pipeline_mode<synchronous>, transform_indices = @transform_1, window_bounds = array<i64: 32, 512>}, {pipeline_mode = #tpu.pipeline_mode<synchronous>, transform_indices = @transform_2, window_bounds = array<i64: 512, 16>}, {pipeline_mode = #tpu.pipeline_mode<synchronous>, transform_indices = @transform_3, window_bounds = array<i64: 16, 16>}, {pipeline_mode = #tpu.pipeline_mode<synchronous>, transform_indices = @transform_4, window_bounds = array<i64: 1, 16>}, {transform_indices = @transform_5, window_bounds = array<i64: 2, 128>}, {transform_indices = @transform_6, window_bounds = array<i64: 2, 128>}]} {
    %c0 = arith.constant 0 : index
    %c0_0 = arith.constant 0 : index
    %0 = vector.load %arg1[%c0, %c0_0] : memref<128x32xbf16, #tpu.memory_space<vmem>>, vector<128x32xbf16>
    %c0_1 = arith.constant 0 : index
    %c0_2 = arith.constant 0 : index
    %1 = vector.load %arg2[%c0_1, %c0_2] : memref<32x512xbf16, #tpu.memory_space<vmem>>, vector<32x512xbf16>
    %cst = arith.constant dense<0.000000e+00> : vector<128x512xf32>
    %2 = tpu.matmul %0, %1, %cst {dimension_numbers = #tpu.dot_dimension_numbers<[1], [0], [0], [1], [0, 0, 1, 1], [], []>} : vector<128x32xbf16>, vector<32x512xbf16>, vector<128x512xf32> -> vector<128x512xf32>
    %cst_3 = arith.constant 0.000000e+00 : f32
    %3 = vector.broadcast %cst_3 : f32 to vector<128x512xf32>
    %4 = arith.maximumf %2, %3 : vector<128x512xf32>
    %5 = vector.shape_cast %4 : vector<128x512xf32> to vector<2x64x512xf32>
    %cst_4 = arith.constant dense<0.000000e+00> : vector<2x512xf32>
    %6 = vector.multi_reduction <add>, %5, %cst_4 [1] : vector<2x64x512xf32> to vector<2x512xf32>
    %7 = arith.mulf %6, %6 : vector<2x512xf32>
    %cst_5 = arith.constant dense<0.000000e+00> : vector<2xf32>
    %8 = vector.multi_reduction <add>, %7, %cst_5 [1] : vector<2x512xf32> to vector<2xf32>
    %9 = vector.shape_cast %8 : vector<2xf32> to vector<2x1xf32>
    %cst_6 = arith.constant 1.000000e-24 : f32
    %10 = vector.broadcast %cst_6 : f32 to vector<2x1xf32>
    %11 = arith.maximumf %9, %10 : vector<2x1xf32>
    %12 = math.rsqrt %11 : vector<2x1xf32>
    %cst_7 = arith.constant 6.78219223 : f32
    %13 = vector.broadcast %cst_7 : f32 to vector<2x1xf32>
    %14 = arith.mulf %13, %12 : vector<2x1xf32>
    %15 = vector.broadcast %14 : vector<2x1xf32> to vector<2x512xf32>
    %16 = arith.mulf %6, %15 : vector<2x512xf32>
    %17 = arith.truncf %16 : vector<2x512xf32> to vector<2x512xbf16>
    %c0_8 = arith.constant 0 : index
    %c0_9 = arith.constant 0 : index
    %18 = vector.load %arg3[%c0_8, %c0_9] : memref<512x16xbf16, #tpu.memory_space<vmem>>, vector<512x16xbf16>
    %cst_10 = arith.constant dense<0.000000e+00> : vector<2x16xf32>
    %19 = tpu.matmul %17, %18, %cst_10 {dimension_numbers = #tpu.dot_dimension_numbers<[1], [0], [0], [1], [0, 0, 1, 1], [], []>} : vector<2x512xbf16>, vector<512x16xbf16>, vector<2x16xf32> -> vector<2x16xf32>
    %20 = arith.truncf %19 : vector<2x16xf32> to vector<2x16xbf16>
    %c0_11 = arith.constant 0 : index
    %c0_12 = arith.constant 0 : index
    %21 = vector.load %arg4[%c0_11, %c0_12] : memref<16x16xbf16, #tpu.memory_space<vmem>>, vector<16x16xbf16>
    %cst_13 = arith.constant dense<0.000000e+00> : vector<2x16xf32>
    %22 = tpu.matmul %20, %21, %cst_13 {dimension_numbers = #tpu.dot_dimension_numbers<[1], [0], [0], [1], [0, 0, 1, 1], [], []>} : vector<2x16xbf16>, vector<16x16xbf16>, vector<2x16xf32> -> vector<2x16xf32>
    %cst_14 = arith.constant 2.000000e+00 : f32
    %23 = vector.broadcast %cst_14 : f32 to vector<2x16xf32>
    %24 = arith.mulf %23, %22 : vector<2x16xf32>
    %c0_15 = arith.constant 0 : index
    %c0_16 = arith.constant 0 : index
    %25 = vector.load %arg5[%c0_15, %c0_16] : memref<1x16xf32, #tpu.memory_space<vmem>>, vector<1x16xf32>
    %26 = vector.broadcast %25 : vector<1x16xf32> to vector<2x16xf32>
    %27 = arith.subf %24, %26 : vector<2x16xf32>
    %28 = tpu.iota {dimensions = array<i32: 1>} : vector<2x16xi32>
    %c8_i32 = arith.constant 8 : i32
    %29 = vector.broadcast %c8_i32 : i32 to vector<2x16xi32>
    %30 = arith.cmpi slt, %28, %29 : vector<2x16xi32>
    %cst_17 = arith.constant 0xFF800000 : f32
    %31 = vector.broadcast %cst_17 : f32 to vector<2x16xf32>
    %32 = arith.select %30, %27, %31 : vector<2x16xi1>, vector<2x16xf32>
    %cst_18 = arith.constant 0xFF800000 : f32
    %33 = vector.broadcast %cst_18 : f32 to vector<2x16xf32>
    %34 = arith.select %30, %33, %27 : vector<2x16xi1>, vector<2x16xf32>
    %cst_19 = arith.constant dense<0xFF800000> : vector<2xf32>
    %35 = vector.multi_reduction <maximumf>, %32, %cst_19 [1] : vector<2x16xf32> to vector<2xf32>
    %36 = vector.shape_cast %35 : vector<2xf32> to vector<2x1xf32>
    %cst_20 = arith.constant dense<0xFF800000> : vector<2xf32>
    %37 = vector.multi_reduction <maximumf>, %34, %cst_20 [1] : vector<2x16xf32> to vector<2xf32>
    %38 = vector.shape_cast %37 : vector<2xf32> to vector<2x1xf32>
    %39 = vector.broadcast %36 : vector<2x1xf32> to vector<2x16xf32>
    %40 = arith.subf %32, %39 : vector<2x16xf32>
    %41 = math.exp %40 : vector<2x16xf32>
    %cst_21 = arith.constant dense<0.000000e+00> : vector<2xf32>
    %42 = vector.multi_reduction <add>, %41, %cst_21 [1] : vector<2x16xf32> to vector<2xf32>
    %43 = vector.shape_cast %42 : vector<2xf32> to vector<2x1xf32>
    %44 = math.log %43 : vector<2x1xf32>
    %45 = vector.broadcast %38 : vector<2x1xf32> to vector<2x16xf32>
    %46 = arith.subf %34, %45 : vector<2x16xf32>
    %47 = math.exp %46 : vector<2x16xf32>
    %cst_22 = arith.constant dense<0.000000e+00> : vector<2xf32>
    %48 = vector.multi_reduction <add>, %47, %cst_22 [1] : vector<2x16xf32> to vector<2xf32>
    %49 = vector.shape_cast %48 : vector<2xf32> to vector<2x1xf32>
    %50 = math.log %49 : vector<2x1xf32>
    %51 = arith.addf %36, %44 : vector<2x1xf32>
    %52 = arith.addf %38, %50 : vector<2x1xf32>
    %53 = vector.shape_cast %51 : vector<2x1xf32> to vector<2x1xf32>
    %54 = vector.broadcast %53 : vector<2x1xf32> to vector<2x16xf32>
    %55 = vector.shape_cast %52 : vector<2x1xf32> to vector<2x1xf32>
    %56 = vector.broadcast %55 : vector<2x1xf32> to vector<2x16xf32>
    %57 = arith.select %30, %54, %56 : vector<2x16xi1>, vector<2x16xf32>
    %58 = arith.subf %27, %57 : vector<2x16xf32>
    %59 = tpu.iota {dimensions = array<i32: 0>} : vector<16x128xi32>
    %60 = tpu.iota {dimensions = array<i32: 1>} : vector<16x128xi32>
    %c8_i32_23 = arith.constant 8 : i32
    %61 = vector.broadcast %c8_i32_23 : i32 to vector<16x128xi32>
    %62 = arith.cmpi slt, %60, %61 : vector<16x128xi32>
    %63 = arith.cmpi eq, %59, %60 : vector<16x128xi32>
    %64 = arith.andi %62, %63 : vector<16x128xi1>
    %cst_24 = arith.constant 5.000000e-01 : f32
    %cst_25 = arith.constant 0.000000e+00 : f32
    %65 = vector.broadcast %cst_24 : f32 to vector<16x128xf32>
    %66 = vector.broadcast %cst_25 : f32 to vector<16x128xf32>
    %67 = arith.select %64, %65, %66 : vector<16x128xi1>, vector<16x128xf32>
    %c8_i32_26 = arith.constant 8 : i32
    %68 = vector.broadcast %c8_i32_26 : i32 to vector<16x128xi32>
    %69 = arith.cmpi slt, %60, %68 : vector<16x128xi32>
    %c8_i32_27 = arith.constant 8 : i32
    %70 = vector.broadcast %c8_i32_27 : i32 to vector<16x128xi32>
    %71 = arith.addi %60, %70 : vector<16x128xi32>
    %72 = arith.cmpi eq, %59, %71 : vector<16x128xi32>
    %73 = arith.andi %69, %72 : vector<16x128xi1>
    %cst_28 = arith.constant 5.000000e-01 : f32
    %cst_29 = arith.constant 0.000000e+00 : f32
    %74 = vector.broadcast %cst_28 : f32 to vector<16x128xf32>
    %75 = vector.broadcast %cst_29 : f32 to vector<16x128xf32>
    %76 = arith.select %73, %74, %75 : vector<16x128xi1>, vector<16x128xf32>
    %77 = arith.addf %67, %76 : vector<16x128xf32>
    %cst_30 = arith.constant dense<0.000000e+00> : vector<2x128xf32>
    %78 = tpu.matmul %58, %77, %cst_30 {dimension_numbers = #tpu.dot_dimension_numbers<[1], [0], [0], [1], [0, 0, 1, 1], [], []>} : vector<2x16xf32>, vector<16x128xf32>, vector<2x128xf32> -> vector<2x128xf32>
    %c0_31 = arith.constant 0 : index
    %c0_32 = arith.constant 0 : index
    %79 = vector.load %arg6[%c0_31, %c0_32] : memref<2x128xf32, #tpu.memory_space<vmem>>, vector<2x128xf32>
    tpu.vector_store %arg6[%c0_31, %c0_32], %78 {strides = array<i32>} : memref<2x128xf32, #tpu.memory_space<vmem>>, vector<2x128xf32>,
    %80 = tpu.iota {dimensions = array<i32: 1>} : vector<2x128xi32>
    %c8_i32_33 = arith.constant 8 : i32
    %81 = vector.broadcast %c8_i32_33 : i32 to vector<2x128xi32>
    %82 = arith.cmpi slt, %80, %81 : vector<2x128xi32>
    %cst_34 = arith.constant 0xFF800000 : f32
    %83 = vector.broadcast %cst_34 : f32 to vector<2x128xf32>
    %84 = arith.select %82, %78, %83 : vector<2x128xi1>, vector<2x128xf32>
    %cst_35 = arith.constant dense<0xFF800000> : vector<2xf32>
    %85 = vector.multi_reduction <maximumf>, %84, %cst_35 [1] : vector<2x128xf32> to vector<2xf32>
    %86 = vector.shape_cast %85 : vector<2xf32> to vector<2x1xf32>
    %87 = vector.broadcast %86 : vector<2x1xf32> to vector<2x128xf32>
    %88 = arith.cmpf oeq, %84, %87 : vector<2x128xf32>
    %c8_i32_36 = arith.constant 8 : i32
    %89 = vector.broadcast %c8_i32_36 : i32 to vector<2x128xi32>
    %90 = arith.select %88, %80, %89 : vector<2x128xi1>, vector<2x128xi32>
    %cst_37 = arith.constant dense<2147483647> : vector<2xi32>
    %91 = vector.multi_reduction <minsi>, %90, %cst_37 [1] : vector<2x128xi32> to vector<2xi32>
    %92 = vector.shape_cast %91 : vector<2xi32> to vector<2x1xi32>
    %93 = vector.shape_cast %92 : vector<2x1xi32> to vector<2x1xi32>
    %94 = vector.broadcast %93 : vector<2x1xi32> to vector<2x128xi32>
    %c0_38 = arith.constant 0 : index
    %c0_39 = arith.constant 0 : index
    %95 = vector.load %arg7[%c0_38, %c0_39] : memref<2x128xi32, #tpu.memory_space<vmem>>, vector<2x128xi32>
    tpu.vector_store %arg7[%c0_38, %c0_39], %94 {strides = array<i32>} : memref<2x128xi32, #tpu.memory_space<vmem>>, vector<2x128xi32>,
    return
  }
  func.func @transform_0(%arg0: i32) -> (i32, i32) {
    %c0_i32 = arith.constant 0 : i32
    %c0_i32_0 = arith.constant 0 : i32
    return %arg0, %c0_i32 : i32, i32
  }
  func.func @transform_1(%arg0: i32) -> (i32, i32) {
    %c0_i32 = arith.constant 0 : i32
    %c0_i32_0 = arith.constant 0 : i32
    %c0_i32_1 = arith.constant 0 : i32
    return %c0_i32, %c0_i32_0 : i32, i32
  }
  func.func @transform_2(%arg0: i32) -> (i32, i32) {
    %c0_i32 = arith.constant 0 : i32
    %c0_i32_0 = arith.constant 0 : i32
    %c0_i32_1 = arith.constant 0 : i32
    return %c0_i32, %c0_i32_0 : i32, i32
  }
  func.func @transform_3(%arg0: i32) -> (i32, i32) {
    %c0_i32 = arith.constant 0 : i32
    %c0_i32_0 = arith.constant 0 : i32
    %c0_i32_1 = arith.constant 0 : i32
    return %c0_i32, %c0_i32_0 : i32, i32
  }
  func.func @transform_4(%arg0: i32) -> (i32, i32) {
    %c0_i32 = arith.constant 0 : i32
    %c0_i32_0 = arith.constant 0 : i32
    %c0_i32_1 = arith.constant 0 : i32
    return %c0_i32, %c0_i32_0 : i32, i32
  }
  func.func @transform_5(%arg0: i32) -> (i32, i32) {
    %c0_i32 = arith.constant 0 : i32
    %c0_i32_0 = arith.constant 0 : i32
    return %arg0, %c0_i32 : i32, i32
  }
  func.func @transform_6(%arg0: i32) -> (i32, i32) {
    %c0_i32 = arith.constant 0 : i32
    %c0_i32_0 = arith.constant 0 : i32
    return %arg0, %c0_i32 : i32, i32
  }
}

</mosaic_0001>

<bundles_post_ra>
// kernel: model_forward.1
= control target key start
LH: loop header
LB: loop body
LE: loop exit
PB: predicated region body
PF: predicated region fallthrough
CT: control target
= control target key end

     0   :  { %v1420_v2 = vmov 0   ;;  %vm128_vm0 = vcmask 261120   ;;  %s1752_s0 = inlined_call_operand.vmem [shape: bf16[128,32], index: 0, kind: input, shape index: {}]   ;;  %s1753_s1 = inlined_call_operand.vmem [shape: bf16[32,512], index: 1, kind: input, shape index: {}]   ;;  %s1754_s2 = inlined_call_operand.vmem [shape: bf16[512,16], index: 2, kind: input, shape index: {}]   ;;  %s1755_s3 = inlined_call_operand.vmem [shape: bf16[16,16], index: 3, kind: input, shape index: {}]   ;;  %s1756_s4 = inlined_call_operand.vmem [shape: f32[1,16], index: 4, kind: input, shape index: {}]   ;;  %s1757_s5 = inlined_call_operand.hbm [shape: f32[2,128], index: 5, kind: output, shape index: {0}]   ;;  %s1758_s6 = inlined_call_operand.vmem [shape: s32[2,128], index: 6, kind: output, shape index: {1}]  }
   0x1   :  { %v1335_v0 = vld [vmem:[%s1753_s1 + $0x24] ss:$16 sps:$4 sm:$0xff]   ;;  %v1337_v1 = vld [vmem:[%s1753_s1 + $0x2c] ss:$16 sps:$4 sm:$0xff]   ;;  %185 = vmatprep.mubr.bf16.mxu0 %v1420_v2  ;;  %298 = vmatprep.mubr.bf16.mxu1 %v1420_v2  ;;  %v1339_v3 = vld [vmem:[%s1753_s1 + $0x20] ss:$16 sps:$4 sm:$0xff]  }
   0x2   :  { %165 = vmatprep.subr.bf16.mxu0 %v1335_v0  ;;  %v1340_v4 = vld [vmem:[%s1753_s1 + $0x28] ss:$16 sps:$4 sm:$0xff]   ;;  %278 = vmatprep.subr.bf16.mxu1 %v1337_v1  ;;  %v1341_v5 = vld [vmem:[%s1753_s1 + $0x4] ss:$16 sps:$4 sm:$0xff]   ;;  %v1343_v6 = vld [vmem:[%s1753_s1 + $0xc] ss:$16 sps:$4 sm:$0xff]  }
   0x3   :  { %166 = vmatpush1.bf16.msra.mxu0 %v1339_v3  ;;  %279 = vmatpush1.bf16.msra.mxu1 %v1340_v4  ;;  %v1345_v7 = vld [vmem:[%s1753_s1] ss:$16 sps:$4 sm:$0xff]   ;;  %v1346_v8 = vld [vmem:[%s1753_s1 + $0x8] ss:$16 sps:$4 sm:$0xff]  }
   0x4   :  { %167 = vmatprep.subr.bf16.mxu0 %v1341_v5  ;;  %280 = vmatprep.subr.bf16.mxu1 %v1343_v6  ;;  %v1347_v9 = vld [vmem:[%s1752_s0] sm:$0xff]   ;;  %v1348_v10 = vld [vmem:[%s1752_s0 + $0x8] sm:$0xff]   ;;  %v1349_v11 = vld [vmem:[%s1752_s0 + $0x10] sm:$0xff]  }
   0x5   :  { %v1350_v12 = vld [vmem:[%s1752_s0 + $0x18] sm:$0xff]  }
   0x7   :  { %168 = vmatpush1.bf16.msra.mxu0 %v1345_v7  ;;  %281 = vmatpush1.bf16.msra.mxu1 %v1346_v8 }
   0xa   :  { %1215 = vmatmul.mubr.msk.bf16.vlgmr.msra.gmra.mxu0 %vm128_vm0, %v1347_v9  ;;  %1223 = vmatmul.mubr.msk.bf16.vlgmr.msra.gmra.mxu1 %vm128_vm0, %v1347_v9 }
   0xb   :  { %195 = vmatprep.mubr.bf16.mxu0 %v1420_v2  ;;  %308 = vmatprep.mubr.bf16.mxu1 %v1420_v2 }
  0x12   :  { %1216 = vmatmul.mubr.msk.bf16.gmra.mxu0 %vm128_vm0, %v1348_v10  ;;  %1224 = vmatmul.mubr.msk.bf16.gmra.mxu1 %vm128_vm0, %v1348_v10 }
  0x13   :  { %205 = vmatprep.mubr.bf16.mxu0 %v1420_v2  ;;  %318 = vmatprep.mubr.bf16.mxu1 %v1420_v2 }
  0x1a   :  { %1217 = vmatmul.mubr.msk.bf16.gmra.mxu0 %vm128_vm0, %v1349_v11  ;;  %1225 = vmatmul.mubr.msk.bf16.gmra.mxu1 %vm128_vm0, %v1349_v11 }
  0x1b   :  { %215 = vmatprep.mubr.bf16.mxu0 %v1420_v2  ;;  %328 = vmatprep.mubr.bf16.mxu1 %v1420_v2 }
  0x22   :  { %1218 = vmatmul.mubr.msk.bf16.gmra.mxu0 %vm128_vm0, %v1350_v12  ;;  %1226 = vmatmul.mubr.msk.bf16.gmra.mxu1 %vm128_vm0, %v1350_v12 }
  0x23   :  { %12 = vsyncpa [#allocation3], 0  ;;  %225 = vmatprep.mubr.bf16.mxu0 %v1420_v2  ;;  %338 = vmatprep.mubr.bf16.mxu1 %v1420_v2  ;;  %v1351_v13 = vld [vmem:[%s1752_s0 + $0x20] sm:$0xff]   ;;  %v1352_v14 = vld [vmem:[%s1752_s0 + $0x28] sm:$0xff]   ;;  %vm563_vm1 = vcmask 1041409   ;;  %vm572_vm2 = vcmask 1041408  }
  0x24   :  { %v1353_v15 = vld [vmem:[%s1752_s0 + $0x30] sm:$0xff]   ;;  %v1354_v16 = vld [vmem:[%s1752_s0 + $0x38] sm:$0xff]   ;;  %v1363_v25 = vld [vmem:[%s1754_s2 + $0x68] sm:$0xff]   ;;  %vm1422_vm3 = vmmov 0   ;;  %vm982_vm4 = vcmask 130048   ;;  %vm1040_vm6 = vcmask 123904  }
  0x25   :  { %v1355_v17 = vld [vmem:[%s1754_s2 + $0x78] sm:$0xff]   ;;  %v1359_v21 = vld [vmem:[%s1754_s2 + $0x70] sm:$0xff]   ;;  %v1364_v26 = vld [vmem:[%s1754_s2 + $0xe8] sm:$0xff]  }
  0x26   :  { %v1356_v18 = vld [vmem:[%s1754_s2 + $0xf8] sm:$0xff]   ;;  %v1360_v22 = vld [vmem:[%s1754_s2 + $0xf0] sm:$0xff]   ;;  %1268 = vmatprep.subr.bf16.mxu0 %v1355_v17  ;;  %v1365_v27 = vld [vmem:[%s1754_s2 + $0x28] sm:$0xff]  }
  0x27   :  { %v1357_v19 = vld [vmem:[%s1754_s2 + $0x38] sm:$0xff]   ;;  %1290 = vmatprep.subr.bf16.mxu1 %v1356_v18  ;;  %v1361_v23 = vld [vmem:[%s1754_s2 + $0x30] sm:$0xff]   ;;  %v1366_v28 = vld [vmem:[%s1754_s2 + $0xa8] sm:$0xff]  }
  0x28   :  { %v1358_v20 = vld [vmem:[%s1754_s2 + $0xb8] sm:$0xff]   ;;  %1269 = vmatpush3.bf16.msra.mxu0 %v1357_v19  ;;  %v1362_v24 = vld [vmem:[%s1754_s2 + $0xb0] sm:$0xff]   ;;  %v1367_v29 = vld [vmem:[%s1754_s2 + $0x60] sm:$0xff]  }
  0x29   :  { %1291 = vmatpush3.bf16.msra.mxu1 %v1358_v20  ;;  %1270 = vmatprep.subr.bf16.mxu0 %v1359_v21  ;;  %v1368_v30 = vld [vmem:[%s1754_s2 + $0xe0] sm:$0xff]   ;;  %v1371_v33 = vld [vmem:[%s1754_s2 + $0x58] sm:$0xff]  }
  0x2a   :  { %1219 = vmatmul.mubr.msk.bf16.gmra.mxu0 %vm128_vm0, %v1351_v13  ;;  %1227 = vmatmul.mubr.msk.bf16.gmra.mxu1 %vm128_vm0, %v1351_v13  ;;  %v1369_v31 = vld [vmem:[%s1754_s2 + $0x20] sm:$0xff]   ;;  %v1372_v34 = vld [vmem:[%s1754_s2 + $0xd8] sm:$0xff]  }
  0x2b   :  { %235 = vmatprep.mubr.bf16.mxu0 %v1420_v2  ;;  %348 = vmatprep.mubr.bf16.mxu1 %v1420_v2  ;;  %v1370_v32 = vld [vmem:[%s1754_s2 + $0xa0] sm:$0xff]  }
  0x2c   :  { %1292 = vmatprep.subr.bf16.mxu1 %v1360_v22  ;;  %1271 = vmatpush3.bf16.msra.mxu0 %v1361_v23 }
  0x2d   :  { %1293 = vmatpush3.bf16.msra.mxu1 %v1362_v24  ;;  %1272 = vmatprep.subr.bf16.mxu0 %v1363_v25 }
  0x2e   :  { %1294 = vmatprep.subr.bf16.mxu1 %v1364_v26 }
  0x30   :  { %1273 = vmatpush3.bf16.msra.mxu0 %v1365_v27 }
  0x31   :  { %1295 = vmatpush3.bf16.msra.mxu1 %v1366_v28  ;;  %1274 = vmatprep.subr.bf16.mxu0 %v1367_v29 }
  0x32   :  { %1220 = vmatmul.mubr.msk.bf16.gmra.mxu0 %vm128_vm0, %v1352_v14  ;;  %1228 = vmatmul.mubr.msk.bf16.gmra.mxu1 %vm128_vm0, %v1352_v14 }
  0x33   :  { %245 = vmatprep.mubr.bf16.mxu0 %v1420_v2  ;;  %358 = vmatprep.mubr.bf16.mxu1 %v1420_v2 }
  0x34   :  { %1296 = vmatprep.subr.bf16.mxu1 %v1368_v30  ;;  %1275 = vmatpush3.bf16.msra.mxu0 %v1369_v31 }
  0x35   :  { %1297 = vmatpush3.bf16.msra.mxu1 %v1370_v32  ;;  %1276 = vmatprep.subr.bf16.mxu0 %v1371_v33 }
  0x36   :  { %1298 = vmatprep.subr.bf16.mxu1 %v1372_v34 }
  0x3a   :  { %1221 = vmatmul.mubr.msk.bf16.gmra.mxu0 %vm128_vm0, %v1353_v15  ;;  %1229 = vmatmul.mubr.msk.bf16.gmra.mxu1 %vm128_vm0, %v1353_v15 }
  0x3b   :  { %255 = vmatprep.mubr.bf16.mxu0 %v1420_v2  ;;  %368 = vmatprep.mubr.bf16.mxu1 %v1420_v2 }
  0x42   :  { %1222 = vmatmul.mubr.msk.bf16.gmra.mxu0 %vm128_vm0, %v1354_v16  ;;  %1230 = vmatmul.mubr.msk.bf16.gmra.mxu1 %vm128_vm0, %v1354_v16 }
  0xca   :  { %v187_v35 = vpop.f32.mrf.mxu0  ;;  %v300_v36 = vpop.f32.mrf.mxu1 }
  0xcb   :  { %v379_v62 = vmax.f32 %v187_v35, 0.0  ;;  %v381_v63 = vmax.f32 %v300_v36, 0.0 }
  0xcc   :  { %v189_v37 = vpop.f32.mrf.mxu0  ;;  %v302_v38 = vpop.f32.mrf.mxu1 }
  0xcd   :  { %v380_v6 = vmax.f32 %v189_v37, 0.0  ;;  %v382_v11 = vmax.f32 %v302_v38, 0.0 }
  0xce   :  { %v191_v39 = vpop.f32.mrf.mxu0  ;;  %v304_v40 = vpop.f32.mrf.mxu1 }
  0xcf   :  { %v383_v59 = vmax.f32 %v191_v39, 0.0  ;;  %v385_v0 = vmax.f32 %v304_v40, 0.0 }
  0xd0   :  { %v193_v41 = vpop.f32.mrf.mxu0  ;;  %v306_v42 = vpop.f32.mrf.mxu1 }
  0xd1   :  { %v384_v4 = vmax.f32 %v193_v41, 0.0  ;;  %v386_v5 = vmax.f32 %v306_v42, 0.0  ;;  %v443_v7 = vadd.f32 %v383_v59, %v379_v62  ;;  %v469_v15 = vadd.f32 %v385_v0, %v381_v63 }
  0xd2   :  { %v197_v43 = vpop.f32.mrf.mxu0  ;;  %v310_v44 = vpop.f32.mrf.mxu1 }
  0xd3   :  { %v387_v1 = vmax.f32 %v197_v43, 0.0  ;;  %v389_v12 = vmax.f32 %v310_v44, 0.0  ;;  %v456_v20 = vadd.f32 %v384_v4, %v380_v6  ;;  %v482_v21 = vadd.f32 %v386_v5, %v382_v11 }
  0xd4   :  { %v199_v45 = vpop.f32.mrf.mxu0  ;;  %v312_v46 = vpop.f32.mrf.mxu1 }
  0xd5   :  { %v388_v13 = vmax.f32 %v199_v45, 0.0  ;;  %v390_v14 = vmax.f32 %v312_v46, 0.0  ;;  %v444_v16 = vadd.f32 %v443_v7, %v387_v1  ;;  %v470_v29 = vadd.f32 %v469_v15, %v389_v12 }
  0xd6   :  { %v201_v47 = vpop.f32.mrf.mxu0  ;;  %v314_v48 = vpop.f32.mrf.mxu1 }
  0xd7   :  { %v391_v8 = vmax.f32 %v201_v47, 0.0  ;;  %v393_v22 = vmax.f32 %v314_v48, 0.0  ;;  %v457_v30 = vadd.f32 %v456_v20, %v388_v13  ;;  %v483_v31 = vadd.f32 %v482_v21, %v390_v14 }
  0xd8   :  { %v203_v49 = vpop.f32.mrf.mxu0  ;;  %v316_v50 = vpop.f32.mrf.mxu1 }
  0xd9   :  { %v392_v23 = vmax.f32 %v203_v49, 0.0  ;;  %v445_v24 = vadd.f32 %v444_v16, %v391_v8  ;;  %v394_v25 = vmax.f32 %v316_v50, 0.0  ;;  %v471_v39 = vadd.f32 %v470_v29, %v393_v22 }
  0xda   :  { %v207_v51 = vpop.f32.mrf.mxu0  ;;  %v320_v52 = vpop.f32.mrf.mxu1 }
  0xdb   :  { %v395_v17 = vmax.f32 %v207_v51, 0.0  ;;  %v397_v32 = vmax.f32 %v320_v52, 0.0  ;;  %v458_v40 = vadd.f32 %v457_v30, %v392_v23  ;;  %v484_v42 = vadd.f32 %v483_v31, %v394_v25 }
  0xdc   :  { %v1578_v53 = vpop.f32.mrf.mxu0  ;;  %v1580_v54 = vpop.f32.mrf.mxu1 }
  0xdd   :  { %v446_v33 = vadd.f32 %v445_v24, %v395_v17  ;;  %v396_v34 = vmax.f32 %v1578_v53, 0.0  ;;  %v398_v35 = vmax.f32 %v1580_v54, 0.0  ;;  %v472_v48 = vadd.f32 %v471_v39, %v397_v32 }
  0xde   :  { %v211_v55 = vpop.f32.mrf.mxu0  ;;  %v1582_v56 = vpop.f32.mrf.mxu1 }
  0xdf   :  { %v399_v26 = vmax.f32 %v211_v55, 0.0  ;;  %v401_v41 = vmax.f32 %v1582_v56, 0.0  ;;  %v459_v51 = vadd.f32 %v458_v40, %v396_v34  ;;  %v485_v52 = vadd.f32 %v484_v42, %v398_v35 }
  0xe0   :  { %v1584_v57 = vpop.f32.mrf.mxu0  ;;  %v1586_v58 = vpop.f32.mrf.mxu1 }
  0xe1   :  { %v447_v43 = vadd.f32 %v446_v33, %v399_v26  ;;  %v400_v44 = vmax.f32 %v1584_v57, 0.0  ;;  %v402_v49 = vmax.f32 %v1586_v58, 0.0  ;;  %v473_v59 = vadd.f32 %v472_v48, %v401_v41 }
  0xe2   :  { %v217_v60 = vpop.f32.mrf.mxu0  ;;  %v1588_v61 = vpop.f32.mrf.mxu1 }
  0xe3   :  { %v403_v36 = vmax.f32 %v217_v60, 0.0  ;;  %v405_v50 = vmax.f32 %v1588_v61, 0.0  ;;  %v460_v62 = vadd.f32 %v459_v51, %v400_v44  ;;  %v486_v4 = vadd.f32 %v485_v52, %v402_v49 }
  0xe4   :  { %v1590_v2 = vpop.f32.mrf.mxu0  ;;  %v1592_v3 = vpop.f32.mrf.mxu1 }
  0xe5   :  { %v448_v53 = vadd.f32 %v447_v43, %v403_v36  ;;  %v404_v56 = vmax.f32 %v1590_v2, 0.0  ;;  %v406_v60 = vmax.f32 %v1592_v3, 0.0  ;;  %v474_v58 = vadd.f32 %v473_v59, %v405_v50 }
  0xe6   :  { %v221_v9 = vpop.f32.mrf.mxu0  ;;  %v1594_v10 = vpop.f32.mrf.mxu1 }
  0xe7   :  { %v407_v45 = vmax.f32 %v221_v9, 0.0  ;;  %v409_v57 = vmax.f32 %v1594_v10, 0.0  ;;  %v461_v8 = vadd.f32 %v460_v62, %v404_v56  ;;  %v487_v9 = vadd.f32 %v486_v4, %v406_v60 }
  0xe8   :  { %v223_v18 = vpop.f32.mrf.mxu0  ;;  %v336_v19 = vpop.f32.mrf.mxu1 }
  0xe9   :  { %v449_v63 = vadd.f32 %v448_v53, %v407_v45  ;;  %v408_v5 = vmax.f32 %v223_v18, 0.0  ;;  %v410_v61 = vmax.f32 %v336_v19, 0.0  ;;  %v475_v11 = vadd.f32 %v474_v58, %v409_v57 }
  0xea   :  { %v1596_v27 = vpop.f32.mrf.mxu0  ;;  %v1598_v28 = vpop.f32.mrf.mxu1 }
  0xeb   :  { %v450_v12 = vrot.slane %v449_v63, 4  ;;  %v462_v14 = vadd.f32 %v461_v8, %v408_v5  ;;  %v1613_v3 = vadd.f32 %v487_v9, %v410_v61  ;;  %v476_v16 = vrot.slane %v475_v11, 4 }
  0xec   :  { %v1602_v37 = vpop.f32.mrf.mxu0  ;;  %v1604_v38 = vpop.f32.mrf.mxu1  ;;  %v413_v17 = vmax.f32 %v1598_v28, 0.0  ;;  %v411_v19 = vmax.f32 %v1596_v27, 0.0 }
  0xed   :  { %v1616_v18 = vadd.f32 %v450_v12, %v449_v63  ;;  %v463_v26 = vrot.slane %v462_v14, 4  ;;  %v489_v29 = vrot.slane %v1613_v3, 4  ;;  %v412_v32 = vmax.f32 %v1602_v37, 0.0 }
  0xee   :  { %v231_v46 = vpop.f32.mrf.mxu0  ;;  %v344_v47 = vpop.f32.mrf.mxu1  ;;  %v414_v33 = vmax.f32 %v1604_v38, 0.0  ;;  %v477_v8 = vadd.f32 %v476_v16, %v475_v11 }
  0xef   :  { %v415_v20 = vmax.f32 %v231_v46, 0.0  ;;  %v417_v21 = vmax.f32 %v344_v47, 0.0  ;;  %v464_v9 = vadd.f32 %v463_v26, %v462_v14 }
  0xf0   :  { %v233_v54 = vpop.f32.mrf.mxu0  ;;  %v346_v55 = vpop.f32.mrf.mxu1  ;;  %v478_v16 = vrot.slane %v477_v8, 2 }
  0xf1   :  { %v416_v22 = vmax.f32 %v233_v54, 0.0  ;;  %v418_v23 = vmax.f32 %v346_v55, 0.0  ;;  %v495_v39 = vadd.f32 %v415_v20, %v411_v19  ;;  %v521_v40 = vadd.f32 %v417_v21, %v413_v17 }
  0xf2   :  { %v237_v0 = vpop.f32.mrf.mxu0  ;;  %v350_v1 = vpop.f32.mrf.mxu1  ;;  %v452_v19 = vrot.slane %v1616_v18, 2  ;;  %v465_v26 = vrot.slane %v464_v9, 2 }
  0xf3   :  { %v419_v30 = vmax.f32 %v237_v0, 0.0  ;;  %v421_v31 = vmax.f32 %v350_v1, 0.0  ;;  %v508_v42 = vadd.f32 %v416_v22, %v412_v32  ;;  %v534_v43 = vadd.f32 %v418_v23, %v414_v33 }
  0xf4   :  { %v239_v6 = vpop.f32.mrf.mxu0  ;;  %v352_v7 = vpop.f32.mrf.mxu1  ;;  %v490_v22 = vadd.f32 %v489_v29, %v1613_v3  ;;  %v453_v3 = vadd.f32 %v452_v19, %v1616_v18 }
  0xf5   :  { %v420_v28 = vmax.f32 %v239_v6, 0.0  ;;  %v422_v34 = vmax.f32 %v352_v7, 0.0  ;;  %v496_v48 = vadd.f32 %v495_v39, %v419_v30  ;;  %v522_v49 = vadd.f32 %v521_v40, %v421_v31 }
  0xf6   :  { %v241_v13 = vpop.f32.mrf.mxu0  ;;  %v354_v2 = vpop.f32.mrf.mxu1  ;;  %v491_v29 = vrot.slane %v490_v22, 2 }
  0xf7   :  { %v423_v27 = vmax.f32 %v241_v13, 0.0  ;;  %v425_v41 = vmax.f32 %v354_v2, 0.0  ;;  %v509_v51 = vadd.f32 %v508_v42, %v420_v28  ;;  %v535_v38 = vadd.f32 %v534_v43, %v422_v34 }
  0xf8   :  { %v243_v10 = vpop.f32.mrf.mxu0  ;;  %v356_v15 = vpop.f32.mrf.mxu1 }
  0xf9   :  { %v424_v44 = vmax.f32 %v243_v10, 0.0  ;;  %v426_v45 = vmax.f32 %v356_v15, 0.0  ;;  %v497_v59 = vadd.f32 %v496_v48, %v423_v27  ;;  %v523_v56 = vadd.f32 %v522_v49, %v425_v41 }
  0xfa   :  { %v247_v24 = vpop.f32.mrf.mxu0  ;;  %v360_v25 = vpop.f32.mrf.mxu1 }
  0xfb   :  { %v427_v50 = vmax.f32 %v247_v24, 0.0  ;;  %v429_v37 = vmax.f32 %v360_v25, 0.0  ;;  %v510_v62 = vadd.f32 %v509_v51, %v424_v44  ;;  %v536_v63 = vadd.f32 %v535_v38, %v426_v45 }
  0xfc   :  { %v249_v35 = vpop.f32.mrf.mxu0  ;;  %v362_v36 = vpop.f32.mrf.mxu1  ;;  %v479_v45 = vadd.f32 %v478_v16, %v477_v8  ;;  %v492_v51 = vadd.f32 %v491_v29, %v490_v22  ;;  %v1380_v29 = vld [vmem:[%s1754_s2 + $0xc8] sm:$0xff]  }
  0xfd   :  { %v428_v52 = vmax.f32 %v249_v35, 0.0  ;;  %v430_v53 = vmax.f32 %v362_v36, 0.0  ;;  %v498_v5 = vadd.f32 %v497_v59, %v427_v50  ;;  %v524_v61 = vadd.f32 %v523_v56, %v429_v37 }
  0xfe   :  { %v251_v46 = vpop.f32.mrf.mxu0  ;;  %v364_v47 = vpop.f32.mrf.mxu1  ;;  %v454_v37 = vrot.slane %v453_v3, 1 }
  0xff   :  { %v431_v60 = vmax.f32 %v251_v46, 0.0  ;;  %v433_v57 = vmax.f32 %v364_v47, 0.0  ;;  %v511_v12 = vadd.f32 %v510_v62, %v428_v52  ;;  %v537_v13 = vadd.f32 %v536_v63, %v430_v53 }
 0x100   :  { %v253_v54 = vpop.f32.mrf.mxu0  ;;  %v366_v55 = vpop.f32.mrf.mxu1  ;;  %v466_v46 = vadd.f32 %v465_v26, %v464_v9  ;;  %v1625_v62 = vadd.f32 %v454_v37, %v453_v3  ;;  %v493_v63 = vrot.slane %v492_v51, 1  ;;  %v1379_v3 = vld [vmem:[%s1754_s2 + $0x48] sm:$0xff]  }
 0x101   :  { %v432_v0 = vmax.f32 %v253_v54, 0.0  ;;  %v434_v1 = vmax.f32 %v366_v55, 0.0  ;;  %v499_v15 = vadd.f32 %v498_v5, %v431_v60  ;;  %v525_v17 = vadd.f32 %v524_v61, %v433_v57 }
 0x102   :  { %v257_v4 = vpop.f32.mrf.mxu0  ;;  %v370_v58 = vpop.f32.mrf.mxu1  ;;  %v480_v55 = vrot.slane %v479_v45, 1  ;;  %v467_v59 = vrot.slane %v466_v46, 1 }
 0x103   :  { %v435_v6 = vmax.f32 %v257_v4, 0.0  ;;  %v437_v7 = vmax.f32 %v370_v58, 0.0  ;;  %v512_v23 = vadd.f32 %v511_v12, %v432_v0  ;;  %v538_v24 = vadd.f32 %v537_v13, %v434_v1 }
 0x104   :  { %v259_v2 = vpop.f32.mrf.mxu0  ;;  %v372_v10 = vpop.f32.mrf.mxu1  ;;  %v1627_v5 = vadd.f32 %v480_v55, %v479_v45  ;;  %v1629_v61 = vadd.f32 %v467_v59, %v466_v46  ;;  %v494_v12 = vadd.f32 %v493_v63, %v492_v51  ;;  %v547_v13 = vmul.f32 %v1625_v62, %v1625_v62  ;;  %v1385_v45 = vld [vmem:[%s1754_s2] sm:$0xff]  }
 0x105   :  { %v436_v20 = vmax.f32 %v259_v2, 0.0  ;;  %v438_v21 = vmax.f32 %v372_v10, 0.0  ;;  %v500_v31 = vadd.f32 %v499_v15, %v435_v6  ;;  %v526_v32 = vadd.f32 %v525_v17, %v437_v7  ;;  %v1386_v46 = vld [vmem:[%s1754_s2 + $0x80] sm:$0xff]  }
 0x106   :  { %v261_v25 = vpop.f32.mrf.mxu0  ;;  %v374_v30 = vpop.f32.mrf.mxu1 }
 0x107   :  { %v439_v11 = vmax.f32 %v261_v25, 0.0  ;;  %v441_v14 = vmax.f32 %v374_v30, 0.0  ;;  %v513_v33 = vadd.f32 %v512_v23, %v436_v20  ;;  %v539_v28 = vadd.f32 %v538_v24, %v438_v21 }
 0x108   :  { %v263_v34 = vpop.f32.mrf.mxu0  ;;  %v376_v35 = vpop.f32.mrf.mxu1  ;;  %v549_v20 = vmul.f32 %v1627_v5, %v1627_v5  ;;  %v548_v21 = vmul.f32 %v1629_v61, %v1629_v61  ;;  %v550_v24 = vmul.f32 %v494_v12, %v494_v12 }
 0x109   :  { %v501_v36 = vadd.f32 %v500_v31, %v439_v11  ;;  %v527_v39 = vadd.f32 %v526_v32, %v441_v14  ;;  %v440_v40 = vmax.f32 %v263_v34, 0.0  ;;  %v442_v27 = vmax.f32 %v376_v35, 0.0  ;;  %v1373_v34 = vld [vmem:[%s1754_s2 + $0x18] sm:$0xff]  }
 0x10a   :  { %v1374_v35 = vld [vmem:[%s1754_s2 + $0x98] sm:$0xff]   ;;  %1277 = vmatpush3.bf16.msra.mxu0 %v1373_v34 }
 0x10b   :  { %v502_v41 = vrot.slane %v501_v36, 4  ;;  %v528_v42 = vrot.slane %v527_v39, 4  ;;  %v514_v43 = vadd.f32 %v513_v33, %v440_v40  ;;  %v540_v44 = vadd.f32 %v539_v28, %v442_v27  ;;  %1299 = vmatpush3.bf16.msra.mxu1 %v1374_v35  ;;  %v1377_v40 = vld [vmem:[%s1754_s2 + $0x10] sm:$0xff]  }
 0x10c   :  { %v1378_v27 = vld [vmem:[%s1754_s2 + $0x90] sm:$0xff]  }
 0x10d   :  { %v503_v47 = vadd.f32 %v502_v41, %v501_v36  ;;  %v529_v48 = vadd.f32 %v528_v42, %v527_v39  ;;  %v515_v49 = vrot.slane %v514_v43, 4  ;;  %v541_v50 = vrot.slane %v540_v44, 4  ;;  %v1375_v36 = vld [vmem:[%s1754_s2 + $0x50] sm:$0xff]   ;;  %v1381_v41 = vld [vmem:[%s1754_s2 + $0x8] sm:$0xff]  }
 0x10e   :  { %v1376_v39 = vld [vmem:[%s1754_s2 + $0xd0] sm:$0xff]   ;;  %1278 = vmatprep.subr.bf16.mxu0 %v1375_v36  ;;  %v1382_v42 = vld [vmem:[%s1754_s2 + $0x88] sm:$0xff]  }
 0x10f   :  { %v504_v38 = vrot.slane %v503_v47, 2  ;;  %v530_v52 = vrot.slane %v529_v48, 2  ;;  %v516_v53 = vadd.f32 %v515_v49, %v514_v43  ;;  %v542_v54 = vadd.f32 %v541_v50, %v540_v44  ;;  %1300 = vmatprep.subr.bf16.mxu1 %v1376_v39  ;;  %1279 = vmatpush3.bf16.msra.mxu0 %v1377_v40  ;;  %v1383_v43 = vld [vmem:[%s1754_s2 + $0x40] sm:$0xff]  }
 0x110   :  { %1301 = vmatpush3.bf16.msra.mxu1 %v1378_v27  ;;  %1280 = vmatprep.subr.bf16.mxu0 %v1379_v3  ;;  %v1384_v44 = vld [vmem:[%s1754_s2 + $0xc0] sm:$0xff]   ;;  %v1035_v27 = vlaneseq }
 0x111   :  { %v505_v18 = vadd.f32 %v504_v38, %v503_v47  ;;  %v531_v56 = vadd.f32 %v530_v52, %v529_v48  ;;  %v517_v60 = vrot.slane %v516_v53, 2  ;;  %v543_v57 = vrot.slane %v542_v54, 2  ;;  %1302 = vmatprep.subr.bf16.mxu1 %v1380_v29 }
 0x112   :  { %v1712_v3 = vand.u32 127, %v1035_v27 }
 0x113   :  { %v506_v0 = vrot.slane %v505_v18, 1  ;;  %v532_v1 = vrot.slane %v531_v56, 1  ;;  %v518_v4 = vadd.f32 %v517_v60, %v516_v53  ;;  %v544_v58 = vadd.f32 %v543_v57, %v542_v54  ;;  %1281 = vmatpush3.bf16.msra.mxu0 %v1381_v41  ;;  %v1265_v41 = vld [vmem:[%s1756_s4] ss:$0 sm:$0xff]  ;;  %s1424_s4 = smov [#allocation2]  }
 0x114   :  { %1303 = vmatpush3.bf16.msra.mxu1 %v1382_v42  ;;  %1282 = vmatprep.subr.bf16.mxu0 %v1383_v43  ;;  %vm1037_vm5 = vcmp.lt.s32.totalorder %v1712_v3, 8  ;;  %s1187_s1 = sshll.u32 %s1424_s4, 4  ;;  %s1188_s1 = int_to_ptr.vmem [resolvable:$true] %s1187_s1 }
 0x115   :  { %v1631_v6 = vadd.f32 %v506_v0, %v505_v18  ;;  %v1633_v7 = vadd.f32 %v532_v1, %v531_v56  ;;  %v519_v8 = vrot.slane %v518_v4, 1  ;;  %v545_v9 = vrot.slane %v544_v58, 1  ;;  %1304 = vmatprep.subr.bf16.mxu1 %v1384_v44  ;;  %s1398_s17 = scalar_lea.vmem %s1188_s1, 32  ;;  %p1403_p1 = scmp.lt.s32.totalorder %s1188_s1, %s1188_s1 }
 0x116   :  { %p1399_p0 = scmp.ne.s32.totalorder %s1188_s1, %s1398_s17  ;;  %p1404_p2 = scmp.lt.s32.totalorder %s1398_s17, %s1398_s17 }
 0x117   :  { %v520_v2 = vadd.f32 %v519_v8, %v518_v4  ;;  %v546_v10 = vadd.f32 %v545_v9, %v544_v58  ;;  %v551_v15 = vmul.f32 %v1631_v6, %v1631_v6  ;;  %v553_v17 = vmul.f32 %v1633_v7, %v1633_v7  ;;  %1283 = vmatpush3.bf16.msra.mxu0 %v1385_v45 }
 0x118   :  { %1305 = vmatpush3.bf16.msra.mxu1 %v1386_v46  ;;  %p1405_p3 = por %p1404_p2, %p1403_p1 }
 0x119   :  { %v552_v19 = vmul.f32 %v520_v2, %v520_v2  ;;  %v554_v22 = vmul.f32 %v546_v10, %v546_v10  ;;  %v564_v23 = vsel %vm563_vm1, %v551_v15, %v547_v13  ;;  %v566_v30 = vsel %vm563_vm1, %v553_v17, %v549_v20 }
 0x11a   :  { %v573_v31 = vsel %vm572_vm2, %v564_v23, 0.0  ;;  %v576_v16 = vsel %vm572_vm2, %v566_v30, 0.0  ;;  %v1387_v30 = vld [vmem:[%s1755_s3] sm:$0xff]   ;;  %p1406_p4 = pnand %p1405_p3, %p1399_p0 }
 0x11b   :  { %v565_v25 = vsel %vm563_vm1, %v552_v19, %v548_v21  ;;  %v567_v11 = vsel %vm563_vm1, %v554_v22, %v550_v24 }
 0x11c   :  { %v574_v32 = vsel %vm572_vm2, %v565_v25, 0.0  ;;  %v578_v33 = vsel %vm572_vm2, %v567_v11, 0.0 }
 0x11d   :  { %v575_v14 = vadd.f32 %v574_v32, %v573_v31  ;;  %v1421_v31 = vmov 0.0  }
 0x11e   :  { %1317 = vmatprep.subr.bf16.mxu0 %v1421_v31  ;;  %1323 = vmatprep.subr.mxu1 %v1421_v31 }
 0x11f   :  { %v577_v26 = vadd.f32 %v576_v16, %v575_v14 }
 0x121   :  { %v579_v28 = vadd.f32 %v578_v33, %v577_v26 }
 0x123   :  { %580 = vadd.xlane.f32.xlu0 %v579_v28 }
 0x1ac   :  { %v581_v47 = vpop.xlane.xlu0 %580 }
 0x1ad   :  { %v582_v48 = vmax.f32 %v581_v47, 1e-24 }
 0x1af   :  { %1388 = vrsqrt.f32 %v582_v48 }
 0x1bc   :  { %v1389_v49 = vpop.eup %1388 }
 0x1bd   :  { %v584_v50 = vmul.f32 6.782192, %v1389_v49 }
 0x1bf   :  { %v586_v37 = vrot.slane %v584_v50, 1  ;;  %v589_v51 = vmul.f32 %v584_v50, %v1625_v62  ;;  %v590_v38 = vmul.f32 %v584_v50, %v1629_v61  ;;  %v591_v52 = vmul.f32 %v584_v50, %v1627_v5 }
 0x1c0   :  { %v592_v53 = vmul.f32 %v584_v50, %v494_v12 }
 0x1c1   :  { %v594_v54 = vmul.f32 %v586_v37, %v520_v2  ;;  %v596_v55 = vmul.f32 %v586_v37, %v546_v10  ;;  %v593_v59 = vmul.f32 %v586_v37, %v1631_v6  ;;  %v598_v18 = vpack.c.bf16 %v590_v38, %v590_v38 }
 0x1c2   :  { %v600_v56 = vpack.c.bf16 %v592_v53, %v592_v53  ;;  %v595_v60 = vmul.f32 %v586_v37, %v1633_v7  ;;  %v597_v0 = vpack.c.bf16 %v589_v51, %v589_v51  ;;  %v599_v4 = vpack.c.bf16 %v591_v52, %v591_v52 }
 0x1c3   :  { %v602_v57 = vpack.c.bf16 %v594_v54, %v594_v54  ;;  %v604_v63 = vpack.c.bf16 %v596_v55, %v596_v55  ;;  %v601_v1 = vpack.c.bf16 %v593_v59, %v593_v59  ;;  %v678_v9 = vunpack.c.l.b16 %v598_v18 }
 0x1c4   :  { %v603_v58 = vpack.c.bf16 %v595_v60, %v595_v60  ;;  %v680_v5 = vunpack.c.l.b16 %v600_v56  ;;  %v677_v10 = vunpack.c.l.b16 %v597_v0  ;;  %v679_v15 = vunpack.c.l.b16 %v599_v4 }
 0x1c5   :  { %v682_v62 = vunpack.c.l.b16 %v602_v57  ;;  %v684_v8 = vunpack.c.l.b16 %v604_v63  ;;  %v681_v61 = vunpack.c.l.b16 %v601_v1  ;;  %v1068_v60 = vshrl.u32 %v1035_v27, 7 }
 0x1c6   :  { %v683_v12 = vunpack.c.l.b16 %v603_v58  ;;  %v1076_v63 = vadd.s32 8, %v1712_v3  ;;  %v1423_v58 = vmov 0.5  }
 0x1c7   :  { %v687_v13 = vrot.slane %v682_v62, 7  ;;  %v691_v2 = vrot.slane %v684_v8, 7  ;;  %v685_v6 = vrot.slane %v681_v61, 7  ;;  %v1069_v57 = vadd.s32 8, %v1068_v60 }
 0x1c8   :  { %v689_v17 = vrot.slane %v683_v12, 7  ;;  %vm1070_vm11 = vcmp.eq.s32.totalorder %v1068_v60, %v1712_v3 }
 0x1c9   :  { %v688_v7 = vsel %vm563_vm1, %v687_v13, %v678_v9  ;;  %v692_v20 = vsel %vm563_vm1, %v691_v2, %v680_v5  ;;  %v686_v21 = vsel %vm563_vm1, %v685_v6, %v677_v10  ;;  %vm1071_vm7 = vcmp.eq.s32.totalorder %v1069_v57, %v1712_v3  ;;  %vm1072_vm12 = vmand %vm1037_vm5, %vm1070_vm11 }
 0x1ca   :  { %v694_v19 = vpack.c.b16 %v688_v7, %v688_v7  ;;  %v696_v22 = vpack.c.b16 %v692_v20, %v692_v20  ;;  %v693_v23 = vpack.c.b16 %v686_v21, %v686_v21  ;;  %v690_v24 = vsel %vm563_vm1, %v689_v17, %v679_v15  ;;  %vm1073_vm9 = vmand %vm1037_vm5, %vm1071_vm7 }
 0x1cb   :  { %v695_v25 = vpack.c.b16 %v690_v24, %v690_v24  ;;  %vm1078_vm8 = vcmp.eq.s32.totalorder %v1069_v57, %v1076_v63  ;;  %v1075_v0 = vsel %vm1073_vm9, 0.5, %v1421_v31 }
 0x1cc   :  { %925 = vmatprep.mubr.bf16.mxu0 %v694_v19  ;;  %965 = vmatprep.mubr.bf16.mxu1 %v696_v22  ;;  %vm1080_vm10 = vmand %vm1037_vm5, %vm1078_vm8 }
 0x1cd   :  { %926 = vmatmul.mubr.bf16.vlgmr.msra.gmra.mxu0 %v693_v23  ;;  %966 = vmatmul.mubr.bf16.vlgmr.msra.gmra.mxu1 %v695_v25  ;;  %v1082_v1 = vsel %vm1080_vm10, 0.5, %v1421_v31 }
 0x1ce   :  { %1318 = vmatpush3.bf16.msra.mxu0 %v1387_v30  ;;  %1319 = vmatprep.mubr.msk.bf16.mxu0 %vm1422_vm3, %v1421_v31  ;;  %v1084_v4 = vadd.f32 %v1082_v1, %v1075_v0 }
 0x1cf   :  { %1327 = vmatprep.mubr.msk.f32.mxu1 %vm1422_vm3, %v1421_v31 }
 0x1d0   :  { %1324 = vmatpush3.msra.mxu1 %v1084_v4 }
 0x1d1   :  { %1325 = vmatprep.subr.mxu1 %v1421_v31 }
 0x1d2   :  { %1326 = vmatpush3.msk.msra.mxu1 %vm1072_vm12, %v1423_v58 }
 0x28d   :  { %v1284_v32 = vpop.f32.mrf.mxu0  ;;  %v1306_v11 = vpop.f32.mrf.mxu1 }
 0x28f   :  { %v1285_v14 = vpop.f32.mrf.mxu0  ;;  %v1307_v16 = vpop.f32.mrf.mxu1 }
 0x290   :  { %v1286_v26 = vadd.f32 %v1285_v14, %v1284_v32  ;;  %v1308_v33 = vadd.f32 %v1307_v16, %v1306_v11 }
 0x291   :  { %v1287_v28 = vpop.f32.mrf.mxu0  ;;  %v1309_v34 = vpop.f32.mrf.mxu1 }
 0x292   :  { %v968_v35 = vadd.f32 %v1308_v33, %v1286_v26 }
 0x293   :  { %v1288_v36 = vpop.f32.mrf.mxu0  ;;  %v1310_v39 = vpop.f32.mrf.mxu1 }
 0x294   :  { %v973_v40 = vpack.c.bf16 %v968_v35, %v968_v35 }
 0x296   :  { %1320 = vmatmul.mubr.msk.bf16.vlgmr.msra.gmra.mxu0 %vm982_vm4, %v973_v40 }
 0x356   :  { %v1020_v29 = vpop.f32.mrf.mxu0 }
 0x357   :  { %v1026_v42 = vmul.f32 2.0, %v1020_v29 }
 0x358   :  { %v1321_v43 = vpop.f32.mrf.mxu0 }
 0x359   :  { %v1034_v44 = vsub.f32 %v1026_v42, %v1265_v41 }
 0x35a   :  { %v1023_v45 = vpop.f32.mrf.mxu0 }
 0x35b   :  { %v1039_v46 = vsel %vm1037_vm5, -inf, %v1034_v44  ;;  %v1038_v47 = vsel %vm1037_vm5, %v1034_v44, -inf }
 0x35c   :  { %v1322_v48 = vpop.f32.mrf.mxu0  ;;  %v1044_v49 = vsel %vm1040_vm6, %v1039_v46, -inf  ;;  %v1041_v50 = vsel %vm1040_vm6, %v1038_v47, -inf }
 0x35d   :  { %1045 = vmax.xlane.f32.xlu1 %v1044_v49  ;;  %1042 = vmax.xlane.f32.xlu0 %v1041_v50 }
 0x3e6   :  { %v1046_v37 = vpop.xlane.xlu1 %1045  ;;  %v1043_v51 = vpop.xlane.xlu0 %1042 }
 0x3e7   :  { %v1055_v38 = vsub.f32 %v1039_v46, %v1046_v37  ;;  %v1047_v52 = vsub.f32 %v1038_v47, %v1043_v51 }
 0x3e9   :  { %v1056_v53 = vmul.f32 1.442695, %v1055_v38  ;;  %v1048_v54 = vmul.f32 1.442695, %v1047_v52 }
 0x3eb   :  { %1390 = vpow2.f32 %v1056_v53 }
 0x3ec   :  { %1392 = vpow2.f32 %v1048_v54 }
 0x3f8   :  { %v1391_v55 = vpop.eup %1390 }
 0x3f9   :  { %v1393_v59 = vpop.eup %1392  ;;  %v1058_v18 = vsel %vm1040_vm6, %v1391_v55, 0.0 }
 0x3fa   :  { %1059 = vadd.xlane.f32.xlu0 %v1058_v18  ;;  %v1050_v56 = vsel %vm1040_vm6, %v1393_v59, 0.0 }
 0x3fb   :  { %1051 = vadd.xlane.f32.xlu1 %v1050_v56 }
 0x483   :  { %v1060_v62 = vpop.xlane.xlu0 %1059 }
 0x484   :  { %v1052_v8 = vpop.xlane.xlu1 %1051  ;;  %1394 = vlog2.f32 %v1060_v62 }
 0x485   :  { %1396 = vlog2.f32 %v1052_v8 }
 0x491   :  { %v1395_v61 = vpop.eup %1394 }
 0x492   :  { %v1397_v9 = vpop.eup %1396  ;;  %v1062_v5 = vmul.f32 0.6931472, %v1395_v61 }
 0x493   :  { %v1054_v12 = vmul.f32 0.6931472, %v1397_v9 }
 0x494   :  { %v1064_v13 = vadd.f32 %v1062_v5, %v1046_v37 }
 0x495   :  { %v1063_v2 = vadd.f32 %v1054_v12, %v1043_v51 }
 0x497   :  { %v1065_v10 = vsel %vm1037_vm5, %v1063_v2, %v1064_v13 }
 0x498   :  { %v1066_v6 = vsub.f32 %v1034_v44, %v1065_v10 }
 0x49a   :  { %1328 = vmatmul.mubr.msk.f32.vlgmr.msra.gmra.mxu1 %vm982_vm4, %v1066_v6 }
 0x55a   :  { %v1154_v15 = vpop.f32.mrf.mxu1 }
 0x55b   :  { %1158 = vst [vmem:[#allocation2] sm:$0x3] %v1154_v15  ;;  %v1159_v17 = vsel %vm1037_vm5, %v1154_v15, -inf }
 0x55c   :  { %v1329_v7 = vpop.f32.mrf.mxu1  ;;  %v1160_v20 = vsel %vm572_vm2, %v1159_v17, -inf }
 0x55d   :  { %1161 = vmax.xlane.f32.xlu1 %v1160_v20 }
 0x5e6   :  { %v1162_v21 = vpop.xlane.xlu1 %1161 }
 0x5e7   :  { %vm1163_vm13 = vcmp.eq.f32.partialorder %v1159_v17, %v1162_v21 }
 0x5e8   :  { %v1164_v19 = vsel %vm1163_vm13, %v1712_v3, 8 }
 0x5e9   :  { %v1165_v22 = vsel %vm572_vm2, %v1164_v19, 2147483647 }
 0x5ea   :  { %v1167_v23 = vshra.s32 %v1165_v22, 16  ;;  %v1166_v25 = vand.u32 65535, %v1165_v22 }
 0x5ec   :  { %v1169_v24 = vcvt.s32.f32 %v1167_v23  ;;  %v1168_v31 = vcvt.s32.f32 %v1166_v25 }
 0x5ee   :  { %1170 = vmin.xlane.f32.xlu0 %v1169_v24 }
 0x677   :  { %v1171_v30 = vpop.xlane.xlu0 %1170 }
 0x678   :  { %vm1172_vm14 = vcmp.eq.f32.partialorder %v1169_v24, %v1171_v30 }
 0x679   :  { %v1173_v32 = vsel %vm1172_vm14, %v1168_v31, inf }
 0x67a   :  { %1174 = vmin.xlane.f32.xlu1 %v1173_v32 }
 0x67b   :  { %1409 = shalt.err (!%p1406_p4)
}
 0x67c   :  { %1190 = dma.vmem_to_hbm [thread:$0]  %s1188_s1, 32, %s1757_s5, [#allocation3]   ;;  %v1177_v11 = vcvt.f32.s32 %v1171_v30 }
 0x67e   :  { %v1178_v16 = vshll.u32 %v1177_v11, 16 }
 0x703   :  { %v1175_v14 = vpop.xlane.xlu1 %1174 }
 0x704   :  { %v1176_v26 = vcvt.f32.s32 %v1175_v14 }
 0x706   :  { %v1179_v33 = vadd.s32 %v1178_v16, %v1176_v26 }
 0x708   :  { %1180 = vst [vmem:[%s1758_s6] sm:$0x3] %v1179_v33 }
 0x709   :  { %1418 = dma.done.wait [#allocation3], 32  }
 0x70a   :  { %1419 = vsyncadd [#allocation3], 4294967264 }
 0x70b   :  { %1198 = vsyncpa [#allocation3], 1 }

</bundles_post_ra>
